<compile_context>
chip_gen: v7x
topology: tpu7x:2x2x1
jax: 0.10.0
libtpu: 0.0.40
codegen_flags: <defaults>
</compile_context>

<pallas_src>
import functools

import jax
import jax.numpy as jnp
from jax import lax
from jax.experimental import pallas as pl
from jax.experimental.pallas import tpu as pltpu


def _focus(z, focusing_factor):
    """Focused feature map: (||z|| / ||z**p||) * z**p, row-wise, z >= 0 (f32)."""
    z_norm = jnp.sqrt(jnp.sum(z * z, axis=-1, keepdims=True))
    if focusing_factor == 3:
        zf = z * z * z                      # pure VPU; avoids exp/log pow
    else:
        zf = z ** focusing_factor
    inv_zf_norm = lax.rsqrt(jnp.sum(zf * zf, axis=-1, keepdims=True))
    # Like the PyTorch reference, an all-zero row (possible after ReLU) gives
    # 0 * inf = NaN; no epsilon is added to keep exact parity.
    return (z_norm * inv_zf_norm) * zf


# ---------------------------------------------------------------------------
# Pass 1: per-(split, batch) partial kv = sum_n k_n^T v_n
# ---------------------------------------------------------------------------
def _kv_kernel(x2_ref, pos_ref, inv_sp_ref, kv_ref, *, focusing_factor,
               mxu_dtype):
    # x2_ref/pos_ref: (tile_n, dim2), inv_sp_ref: (1, dim2)
    # kv_ref: (B, dim2, dim2) resident accumulator (out block index depends
    # only on the leading "parallel" split axis).
    t = pl.program_id(1)
    b = pl.program_id(2)

    x2 = x2_ref[...]                                        # v = input2 tile
    k = jnp.maximum(x2 + pos_ref[...], 0.0) * inv_sp_ref[...]
    kf = _focus(k, focusing_factor)

    # kf^T @ v without materializing a transpose: contract the N dim of both
    # operands (transposed-LHS MXU path, no XLU vxpose of the tile).
    partial = lax.dot_general(
        kf.astype(mxu_dtype), x2.astype(mxu_dtype),
        dimension_numbers=(((0,), (0,)), ((), ())),
        preferred_element_type=jnp.float32)

    @pl.when(t == 0)
    def _():
        kv_ref[b] = partial

    @pl.when(t != 0)
    def _():
        kv_ref[b] = kv_ref[b] + partial


# ---------------------------------------------------------------------------
# Pass 2: q path, x = q @ kv, sigmoid gate
# ---------------------------------------------------------------------------
def _out_kernel(x1_ref, pos_ref, w_ref, inv_sp_ref, kv_ref, o_ref, *,
                focusing_factor, mxu_dtype):
    # x1_ref: (tile_n, dim1), w_ref: (dim1, dim2) [mxu_dtype],
    # kv_ref: (dim2, dim2) [mxu_dtype, block-diag masked, already / N]
    x1 = x1_ref[...]
    q_pre = jnp.dot(x1.astype(mxu_dtype), w_ref[...],
                    preferred_element_type=jnp.float32)
    q = jnp.maximum(q_pre + pos_ref[...], 0.0) * inv_sp_ref[...]
    qf = _focus(q, focusing_factor)
    # Single full-width matmul against the block-diagonal masked kv replaces
    # the per-head (N, hd) @ (hd, hd) loop + concatenate.
    x = jnp.dot(qf.astype(mxu_dtype), kv_ref[...],
                preferred_element_type=jnp.float32)
    o_ref[...] = jax.nn.sigmoid(x) * x1                     # needs dim1 == dim2


# ---------------------------------------------------------------------------
# Wrapper
# ---------------------------------------------------------------------------
def _vmem_budget_bytes():
    """Generation-aware scoped-VMEM budget (v7x: 64 MiB/core; v5e/v6e: 128)."""
    try:
        cap = pltpu.get_tpu_info().vmem_capacity_bytes
    except Exception:
        cap = 64 * 1024 * 1024          # conservative (v7x-sized) fallback
    return max(32 * 1024 * 1024, min(int(cap * 0.75), 100 * 1024 * 1024))


def _auto_tile_n(N, dim, vmem_budget):
    """Largest N-tile (divisor of N, multiple of 8, <= 8192) whose pass-2
    working set (~3 double-buffered (tile_n, dim) f32 blocks) fits in half the
    VMEM budget."""
    max_by_vmem = int(vmem_budget // 2) // (6 * dim * 4)
    max_tile = max(8, min(8192, max_by_vmem))
    if N <= max_tile:
        return N
    for t in range(min(max_tile, N), 7, -1):
        if N % t == 0 and t % 8 == 0:
            return t
    return N


def attention_pallas(input1, input2, conv_w, pos_enc, scale_param, *,
                     num_heads, focusing_factor=3, tile_n=None,
                     mxu_dtype=jnp.bfloat16, vmem_limit_bytes=None):
    """input1: (B, N, dim1), input2: (B, N, dim2), conv_w: (dim1, dim2),
    pos_enc: (N, dim2), scale_param: (1, dim2) -> output (B, N, dim2)."""
    B, N, dim1 = input1.shape
    dim2 = input2.shape[-1]
    assert dim2 % num_heads == 0, "dim2 must be divisible by num_heads"
    assert dim1 == dim2, "final sigmoid(x) * input1 broadcast needs dim1 == dim2"

    vmem_budget = vmem_limit_bytes or _vmem_budget_bytes()
    if tile_n is None:
        tile_n = _auto_tile_n(N, max(dim1, dim2), vmem_budget)
    tile_n = min(tile_n, N)
    assert N % tile_n == 0, "N must be divisible by tile_n"
    if tile_n < N:
        assert tile_n % 8 == 0, "tile_n must be a multiple of 8 when tiling N"
    n_tiles = N // tile_n

    # Split the pass-1 N reduction in two so both v7x TensorCores have work
    # even when B == 1; the two tiny partials are summed in the wrapper.
    num_splits = 2 if (n_tiles >= 2 and n_tiles % 2 == 0) else 1
    tiles_per_split = n_tiles // num_splits

    # Hoisted, batch-invariant: reciprocal of softplus(scale) computed once.
    inv_sp = (1.0 / jax.nn.softplus(scale_param.astype(jnp.float32))
              ).astype(jnp.float32)
    w_cast = conv_w.astype(mxu_dtype)

    # ---- pass 1: partial kv = k^T @ v per (split, batch) ------------------
    kv_kernel = functools.partial(_kv_kernel, focusing_factor=focusing_factor,
                                  mxu_dtype=mxu_dtype)
    kv_partial = pl.pallas_call(
        kv_kernel,
        out_shape=jax.ShapeDtypeStruct((num_splits, B, dim2, dim2),
                                       jnp.float32),
        grid_spec=pltpu.PrefetchScalarGridSpec(
            num_scalar_prefetch=0,
            # B innermost: pos_enc block index depends only on (s, t) so the
            # pos tile stays resident across batches instead of being re-DMA'd.
            grid=(num_splits, tiles_per_split, B),
            in_specs=[
                pl.BlockSpec((None, tile_n, dim2),
                             lambda s, t, b: (b, s * tiles_per_split + t, 0)),
                pl.BlockSpec((tile_n, dim2),
                             lambda s, t, b: (s * tiles_per_split + t, 0)),
                pl.BlockSpec((1, dim2), lambda s, t, b: (0, 0)),
            ],
            # Output block index depends only on the parallel split axis, so
            # the (B, dim2, dim2) accumulator stays resident and is copied to
            # HBM exactly once per split.
            out_specs=pl.BlockSpec((None, B, dim2, dim2),
                                   lambda s, t, b: (s, 0, 0, 0)),
        ),
        compiler_params=pltpu.CompilerParams(
            dimension_semantics=("parallel", "arbitrary", "arbitrary"),
            vmem_limit_bytes=vmem_budget),
    )(input2, pos_enc, inv_sp)

    # Tiny XLA epilogue on the (num_splits, B, dim2, dim2) partials:
    # sum splits, apply the block-diagonal per-head mask and the 1/N scale
    # (the reference's two N**-0.5 factors).
    hd = dim2 // num_heads
    head_mask = (jnp.arange(dim2)[:, None] // hd
                 == jnp.arange(dim2)[None, :] // hd).astype(jnp.float32)
    kv = (kv_partial.sum(axis=0) * (head_mask * (1.0 / N))).astype(mxu_dtype)

    # ---- pass 2: q path, x = q @ kv, sigmoid gate -------------------------
    out_kernel = functools.partial(_out_kernel,
                                   focusing_factor=focusing_factor,
                                   mxu_dtype=mxu_dtype)
    out = pl.pallas_call(
        out_kernel,
        out_shape=jax.ShapeDtypeStruct((B, N, dim2), jnp.float32),
        grid_spec=pltpu.PrefetchScalarGridSpec(
            num_scalar_prefetch=0,
            grid=(n_tiles, B),            # B innermost -> pos tile resident
            in_specs=[
                pl.BlockSpec((None, tile_n, dim1), lambda t, b: (b, t, 0)),
                pl.BlockSpec((tile_n, dim2), lambda t, b: (t, 0)),
                pl.BlockSpec((dim1, dim2), lambda t, b: (0, 0)),
                pl.BlockSpec((1, dim2), lambda t, b: (0, 0)),
                pl.BlockSpec((None, dim2, dim2), lambda t, b: (b, 0, 0)),
            ],
            out_specs=pl.BlockSpec((None, tile_n, dim2),
                                   lambda t, b: (b, t, 0)),
        ),
        compiler_params=pltpu.CompilerParams(
            dimension_semantics=("parallel", "parallel"),
            vmem_limit_bytes=vmem_budget),
    )(input1, pos_enc, w_cast, inv_sp, kv)
    return out


# ---------------------------------------------------------------------------
# Pure-JAX reference (mirrors the PyTorch module)
# ---------------------------------------------------------------------------
def attention_reference(input1, input2, conv_w, pos_enc, scale_param, *,
                        num_heads, focusing_factor=3):
    B, N, _ = input1.shape
    dim2 = input2.shape[-1]
    q = jax.nn.relu(jnp.einsum("bnc,cd->bnd", input1, conv_w) + pos_enc[None])
    k = jax.nn.relu(input2 + pos_enc[None])
    sp = jax.nn.softplus(scale_param)
    q, k = q / sp, k / sp

    def focus(z):
        zn = jnp.linalg.norm(z, axis=-1, keepdims=True)
        zf = z ** focusing_factor
        return zn / jnp.linalg.norm(zf, axis=-1, keepdims=True) * zf

    q, k = focus(q), focus(k)
    hd = dim2 // num_heads
    qh = q.reshape(B, N, num_heads, hd).transpose(0, 2, 1, 3)
    kh = k.reshape(B, N, num_heads, hd).transpose(0, 2, 1, 3)
    vh = input2.reshape(B, N, num_heads, hd).transpose(0, 2, 1, 3)
    kv = jnp.einsum("bhnd,bhne->bhde", kh, vh) / N
    x = jnp.einsum("bhnd,bhde->bhne", qh, kv)
    x = x.transpose(0, 2, 1, 3).reshape(B, N, dim2)
    return jax.nn.sigmoid(x) * input1


def _run_case(B, N, dim, num_heads, seed, *, tile_n=None,
              mxu_dtype=jnp.float32, atol=1e-3, rtol=1e-3, max_abs=None):
    key = jax.random.PRNGKey(seed)
    k1, k2, k3, k4, k5 = jax.random.split(key, 5)
    input1 = jax.random.normal(k1, (B, N, dim), jnp.float32)
    input2 = jax.random.normal(k2, (B, N, dim), jnp.float32)
    conv_w = jax.random.normal(k3, (dim, dim), jnp.float32) * 0.1
    pos_enc = jax.random.normal(k4, (N, dim), jnp.float32) * 0.1
    scale_param = jax.random.normal(k5, (1, dim), jnp.float32) * 0.1

    out = attention_pallas(input1, input2, conv_w, pos_enc, scale_param,
                           num_heads=num_heads, focusing_factor=3,
                           tile_n=tile_n, mxu_dtype=mxu_dtype)
    out = jax.block_until_ready(out)
    ref = attention_reference(input1, input2, conv_w, pos_enc, scale_param,
                              num_heads=num_heads, focusing_factor=3)
    assert out.shape == (B, N, dim)
    assert bool(jnp.isfinite(out).all())
    diff = float(jnp.max(jnp.abs(out - ref)))
    if max_abs is not None:            # bf16-MXU smoke tolerance
        assert diff < max_abs, f"max abs diff {diff}"
    else:
        assert jnp.allclose(out, ref, atol=atol, rtol=rtol), \
            f"max abs diff {diff}"


if __name__ == "__main__":
    # f32 MXU operands: tight parity with the reference (single N tile).
    _run_case(B=2, N=64, dim=32, num_heads=4, seed=0, mxu_dtype=jnp.float32)
    # Multi-tile + 2-way reduction split: exercises the resident kv
    # accumulator, the split-sum epilogue and the reordered grids.
    _run_case(B=2, N=1024, dim=32, num_heads=4, seed=1, tile_n=256,
              mxu_dtype=jnp.float32)
    # Default perf path: bf16 MXU operands, f32 accumulation/elementwise.
    _run_case(B=2, N=512, dim=64, num_heads=4, seed=2, tile_n=128,
              mxu_dtype=jnp.bfloat16, max_abs=0.2)
    print("KERNEL_OK")
</pallas_src>

<mosaic_0001>
module attributes {stable_mosaic.version = 11 : i64} {
  func.func @_kv_kernel(%arg0: i32, %arg1: i32, %arg2: i32, %arg3: memref<1x64x32xf32, #tpu.memory_space<vmem>>, %arg4: memref<64x32xf32, #tpu.memory_space<vmem>>, %arg5: memref<1x32xf32, #tpu.memory_space<vmem>>, %arg6: memref<1x2x32x32xf32, #tpu.memory_space<vmem>>) attributes {dimension_semantics = [#tpu.dimension_semantics<parallel>, #tpu.dimension_semantics<arbitrary>, #tpu.dimension_semantics<arbitrary>], iteration_bounds = array<i64: 1, 1, 2>, scalar_prefetch = 0 : i64, scratch_operands = 0 : i64, tpu.core_type = #tpu.core_type<tc>, window_params = [{transform_indices = @transform_0, window_bounds = array<i64: 1, 64, 32>}, {transform_indices = @transform_1, window_bounds = array<i64: 64, 32>}, {pipeline_mode = #tpu.pipeline_mode<synchronous>, transform_indices = @transform_2, window_bounds = array<i64: 1, 32>}, {transform_indices = @transform_3, window_bounds = array<i64: 1, 2, 32, 32>}]} {
    %c0 = arith.constant 0 : index
    %c0_0 = arith.constant 0 : index
    %c0_1 = arith.constant 0 : index
    %0 = vector.load %arg3[%c0, %c0_0, %c0_1] : memref<1x64x32xf32, #tpu.memory_space<vmem>>, vector<1x64x32xf32>
    %1 = vector.shape_cast %0 : vector<1x64x32xf32> to vector<64x32xf32>
    %c0_2 = arith.constant 0 : index
    %c0_3 = arith.constant 0 : index
    %2 = vector.load %arg4[%c0_2, %c0_3] : memref<64x32xf32, #tpu.memory_space<vmem>>, vector<64x32xf32>
    %3 = arith.addf %1, %2 : vector<64x32xf32>
    %cst = arith.constant 0.000000e+00 : f32
    %4 = vector.broadcast %cst : f32 to vector<64x32xf32>
    %5 = arith.maximumf %3, %4 : vector<64x32xf32>
    %c0_4 = arith.constant 0 : index
    %c0_5 = arith.constant 0 : index
    %6 = vector.load %arg5[%c0_4, %c0_5] : memref<1x32xf32, #tpu.memory_space<vmem>>, vector<1x32xf32>
    %7 = vector.broadcast %6 : vector<1x32xf32> to vector<64x32xf32>
    %8 = arith.mulf %5, %7 : vector<64x32xf32>
    %9 = arith.mulf %8, %8 : vector<64x32xf32>
    %cst_6 = arith.constant dense<0.000000e+00> : vector<64xf32>
    %10 = vector.multi_reduction <add>, %9, %cst_6 [1] : vector<64x32xf32> to vector<64xf32>
    %11 = vector.shape_cast %10 : vector<64xf32> to vector<64x1xf32>
    %12 = math.sqrt %11 : vector<64x1xf32>
    %13 = arith.mulf %8, %8 : vector<64x32xf32>
    %14 = arith.mulf %13, %8 : vector<64x32xf32>
    %15 = arith.mulf %14, %14 : vector<64x32xf32>
    %cst_7 = arith.constant dense<0.000000e+00> : vector<64xf32>
    %16 = vector.multi_reduction <add>, %15, %cst_7 [1] : vector<64x32xf32> to vector<64xf32>
    %17 = vector.shape_cast %16 : vector<64xf32> to vector<64x1xf32>
    %18 = math.rsqrt %17 : vector<64x1xf32>
    %19 = arith.mulf %12, %18 : vector<64x1xf32>
    %20 = vector.broadcast %19 : vector<64x1xf32> to vector<64x32xf32>
    %21 = arith.mulf %20, %14 : vector<64x32xf32>
    %cst_8 = arith.constant dense<0.000000e+00> : vector<32x32xf32>
    %22 = tpu.matmul %21, %1, %cst_8 {dimension_numbers = #tpu.dot_dimension_numbers<[0], [0], [1], [1], [0, 1, 1, 1], [], []>} : vector<64x32xf32>, vector<64x32xf32>, vector<32x32xf32> -> vector<32x32xf32>
    %c0_i32 = arith.constant 0 : i32
    %23 = arith.cmpi eq, %arg1, %c0_i32 : i32
    %24 = arith.extui %23 : i1 to i32
    %c0_i32_9 = arith.constant 0 : i32
    %25 = arith.cmpi ne, %24, %c0_i32_9 : i32
    scf.if %25 {
      %c0_12 = arith.constant 0 : index
      %29 = arith.index_cast %arg2 : i32 to index
      %c0_13 = arith.constant 0 : index
      %c0_14 = arith.constant 0 : index
      %30 = vector.load %arg6[%c0_12, %29, %c0_13, %c0_14] : memref<1x2x32x32xf32, #tpu.memory_space<vmem>>, vector<1x1x32x32xf32>
      %31 = vector.shape_cast %30 : vector<1x1x32x32xf32> to vector<32x32xf32>
      %32 = vector.shape_cast %22 : vector<32x32xf32> to vector<1x1x32x32xf32>
      tpu.vector_store %arg6[%c0_12, %29, %c0_13, %c0_14], %32 {strides = array<i32>} : memref<1x2x32x32xf32, #tpu.memory_space<vmem>>, vector<1x1x32x32xf32>,
    } else {
    }
    %c0_i32_10 = arith.constant 0 : i32
    %26 = arith.cmpi ne, %arg1, %c0_i32_10 : i32
    %27 = arith.extui %26 : i1 to i32
    %c0_i32_11 = arith.constant 0 : i32
    %28 = arith.cmpi ne, %27, %c0_i32_11 : i32
    scf.if %28 {
      %c0_12 = arith.constant 0 : index
      %29 = arith.index_cast %arg2 : i32 to index
      %c0_13 = arith.constant 0 : index
      %c0_14 = arith.constant 0 : index
      %30 = vector.load %arg6[%c0_12, %29, %c0_13, %c0_14] : memref<1x2x32x32xf32, #tpu.memory_space<vmem>>, vector<1x1x32x32xf32>
      %31 = vector.shape_cast %30 : vector<1x1x32x32xf32> to vector<32x32xf32>
      %32 = arith.addf %31, %22 : vector<32x32xf32>
      %c0_15 = arith.constant 0 : index
      %33 = arith.index_cast %arg2 : i32 to index
      %c0_16 = arith.constant 0 : index
      %c0_17 = arith.constant 0 : index
      %34 = vector.load %arg6[%c0_15, %33, %c0_16, %c0_17] : memref<1x2x32x32xf32, #tpu.memory_space<vmem>>, vector<1x1x32x32xf32>
      %35 = vector.shape_cast %34 : vector<1x1x32x32xf32> to vector<32x32xf32>
      %36 = vector.shape_cast %32 : vector<32x32xf32> to vector<1x1x32x32xf32>
      tpu.vector_store %arg6[%c0_15, %33, %c0_16, %c0_17], %36 {strides = array<i32>} : memref<1x2x32x32xf32, #tpu.memory_space<vmem>>, vector<1x1x32x32xf32>,
    } else {
    }
    return
  }
  func.func @transform_0(%arg0: i32, %arg1: i32, %arg2: i32) -> (i32, i32, i32) {
    %c1_i32 = arith.constant 1 : i32
    %0 = arith.muli %arg0, %c1_i32 : i32
    %1 = arith.addi %0, %arg1 : i32
    %c0_i32 = arith.constant 0 : i32
    %c0_i32_0 = arith.constant 0 : i32
    return %arg2, %1, %c0_i32 : i32, i32, i32
  }
  func.func @transform_1(%arg0: i32, %arg1: i32, %arg2: i32) -> (i32, i32) {
    %c1_i32 = arith.constant 1 : i32
    %0 = arith.muli %arg0, %c1_i32 : i32
    %1 = arith.addi %0, %arg1 : i32
    %c0_i32 = arith.constant 0 : i32
    %c0_i32_0 = arith.constant 0 : i32
    return %1, %c0_i32 : i32, i32
  }
  func.func @transform_2(%arg0: i32, %arg1: i32, %arg2: i32) -> (i32, i32) {
    %c0_i32 = arith.constant 0 : i32
    %c0_i32_0 = arith.constant 0 : i32
    %c0_i32_1 = arith.constant 0 : i32
    return %c0_i32, %c0_i32_0 : i32, i32
  }
  func.func @transform_3(%arg0: i32, %arg1: i32, %arg2: i32) -> (i32, i32, i32, i32) {
    %c0_i32 = arith.constant 0 : i32
    %c0_i32_0 = arith.constant 0 : i32
    %c0_i32_1 = arith.constant 0 : i32
    %c0_i32_2 = arith.constant 0 : i32
    return %arg0, %c0_i32, %c0_i32_0, %c0_i32_1 : i32, i32, i32, i32
  }
}

</mosaic_0001>

<bundles_post_ra>
// kernel: tpu_custom_call.1
= control target key start
LH: loop header
LB: loop body
LE: loop exit
PB: predicated region body
PF: predicated region fallthrough
CT: control target
= control target key end

     0   :  { %8 = vsyncpa [#allocation3], 0  ;;  %s901_s12 = smov 0   ;;  %s903_s13 = smov 0   ;;  %s1126_s0 = inlined_call_operand.vmem [shape: f32[2,64,32], index: 0, kind: input, shape index: {}]   ;;  %s1127_s1 = inlined_call_operand.vmem [shape: f32[64,32], index: 1, kind: input, shape index: {}]   ;;  %s1128_s2 = inlined_call_operand.vmem [shape: f32[1,32], index: 2, kind: input, shape index: {}]   ;;  %s1129_s3 = inlined_call_operand.hbm [shape: f32[1,2,32,32], index: 3, kind: output, shape index: {}]  }
   0x1   :  { %s905_s14 = smov 0  }
   0x2 LB: > { %s681_s15 = sadd.s32 4294967295, %s876_s14   ;;  %s26_s16 = sadd.s32 1, %s872_s13  ;;  %s876_s14 = sphi %s905_s14, %s14_s14   ;;  %s872_s13 = sphi %s903_s13, %s1132_s13   ;;  %s868_s12 = sphi %s901_s12, %s1131_s12  }
   0x3   : > { %p27_p0 = scmp.ge.s32.totalorder %s26_s16, 2  ;;  %p685_p1 = scmp.ge.s32.totalorder %s876_s14, 1 }
   0x4   : > { %p183_p2 = scmp.lt.s32.totalorder %s876_s14, 3 }
   0x5   : > { %s1134_s16 = smov (%p27_p0, %s26_s16), 0 }
   0x6   : > { %p184_p3 = pnand %p685_p1, %p183_p2 }
   0x7   : > { %p215_p4 = scmp.lt.s32.totalorder (!%p184_p3), %s868_s12, 1  ;;  %v243_v0 = vld [vmem:[%s1127_s1 + $0x10] sm:$0xff] (!%p184_p3)  ;;  %v241_v1 = vld [vmem:[%s1127_s1] sm:$0xff] (!%p184_p3)  ;;  %v242_v2 = vld [vmem:[%s1127_s1 + $0x8] sm:$0xff] (!%p184_p3)  ;;  %vm288_vm0 = vcmask (!%p184_p3), 261120   ;;  %s878_s20 = smov (!%p184_p3), [#allocation2]  }
   0x8   : > { %187 = sbr.rel (%p184_p3) target bundleno = 561 (0x231), region = 32  ;;  %v244_v3 = vld [vmem:[%s1127_s1 + $0x18] sm:$0xff] (!%p184_p3)  ;;  %v245_v4 = vld [vmem:[%s1127_s1 + $0x20] sm:$0xff] (!%p184_p3)  ;;  %v246_v20 = vld [vmem:[%s1127_s1 + $0x28] sm:$0xff] (!%p184_p3)  ;;  %s600_s21 = sshll.u32 (!%p184_p3), %s878_s20, 4  ;;  %s601_s21 = int_to_ptr.vmem [resolvable:$true] %s600_s21 }
   0x9   : > { %v688_v13 = vld [vmem:[%s1128_s2] ss:$0 sm:$0xff] (!%p184_p3)  ;;  %v247_v28 = vld [vmem:[%s1127_s1 + $0x30] sm:$0xff] (!%p184_p3)  ;;  %v248_v34 = vld [vmem:[%s1127_s1 + $0x38] sm:$0xff] (!%p184_p3)  ;;  %p1089_p5 = scmp.eq.s32.totalorder (!%p184_p3), %s681_s15, 1  ;;  %p831_p9 = scmp.lt.s32.totalorder (!%p184_p3), %s601_s21, %s601_s21 }
   0xf   : > { %s216_s17 = scalar_select %p215_p4, %s868_s12, 1 }
  0x11   : > { %s699_s18 = sshll.u32 %s216_s17, 6 }
  0x12   : > { %s936_s27 = scalar_lea.vmem %s1126_s0, %s699_s18  ;;  %s693_s18 = sshll.u32 %s868_s12, 5 }
  0x13   : > { %v945_v5 = vld [vmem:[%s936_s27 + $0x10] sm:$0xff]  ;;  %v948_v6 = vld [vmem:[%s936_s27] sm:$0xff]  ;;  %v951_v7 = vld [vmem:[%s936_s27 + $0x8] sm:$0xff]  ;;  %s568_s19 = scalar_lea.vmem [#allocation2], %s693_s18  ;;  %s824_s12 = scalar_lea.vmem %s601_s21, 1024 }
  0x14   : > { %v251_v8 = vadd.f32 %v243_v0, %v945_v5  ;;  %v249_v9 = vadd.f32 %v241_v1, %v948_v6  ;;  %v250_v10 = vadd.f32 %v242_v2, %v951_v7  ;;  %v957_v11 = vld [vmem:[%s936_s27 + $0x18] sm:$0xff]  ;;  %v960_v12 = vld [vmem:[%s936_s27 + $0x20] sm:$0xff]  ;;  %v968_v19 = vld [vmem:[%s936_s27 + $0x28] sm:$0xff]  ;;  %p825_p6 = scmp.ne.s32.totalorder %s601_s21, %s824_s12  ;;  %p832_p10 = scmp.lt.s32.totalorder %s824_s12, %s824_s12 }
  0x15   : > { %v252_v14 = vadd.f32 %v244_v3, %v957_v11  ;;  %v253_v15 = vadd.f32 %v245_v4, %v960_v12  ;;  %v254_v26 = vadd.f32 %v246_v20, %v968_v19  ;;  %v975_v27 = vld [vmem:[%s936_s27 + $0x30] sm:$0xff]  ;;  %v981_v33 = vld [vmem:[%s936_s27 + $0x38] sm:$0xff] }
  0x16   : > { %v259_v16 = vmax.f32 %v251_v8, 0.0  ;;  %v257_v17 = vmax.f32 %v249_v9, 0.0  ;;  %v258_v18 = vmax.f32 %v250_v10, 0.0  ;;  %v255_v38 = vadd.f32 %v247_v28, %v975_v27  ;;  %p826_p7 = pnand %p825_p6, %p1089_p5  ;;  %p833_p11 = por %p832_p10, %p831_p9 }
  0x17   : > { %v260_v21 = vmax.f32 %v252_v14, 0.0  ;;  %v261_v25 = vmax.f32 %v253_v15, 0.0  ;;  %v262_v41 = vmax.f32 %v254_v26, 0.0  ;;  %v256_v42 = vadd.f32 %v248_v34, %v981_v33 }
  0x18   : > { %v274_v22 = vmul.f32 %v688_v13, %v259_v16  ;;  %v272_v23 = vmul.f32 %v688_v13, %v257_v17  ;;  %v273_v24 = vmul.f32 %v688_v13, %v258_v18  ;;  %v263_v51 = vmax.f32 %v255_v38, 0.0  ;;  %p827_p8 = pneg %p826_p7 }
  0x19   : > { %v275_v32 = vmul.f32 %v688_v13, %v260_v21  ;;  %v276_v40 = vmul.f32 %v688_v13, %v261_v25  ;;  %v277_v50 = vmul.f32 %v688_v13, %v262_v41  ;;  %v264_v52 = vmax.f32 %v256_v42, 0.0 }
  0x1a   : > { %v282_v29 = vmul.f32 %v274_v22, %v274_v22  ;;  %v280_v30 = vmul.f32 %v272_v23, %v272_v23  ;;  %v281_v31 = vmul.f32 %v273_v24, %v273_v24  ;;  %v278_v58 = vmul.f32 %v688_v13, %v263_v51  ;;  %p834_p12 = pnand %p833_p11, %p827_p8 }
  0x1b   : > { %v283_v46 = vmul.f32 %v275_v32, %v275_v32  ;;  %v284_v49 = vmul.f32 %v276_v40, %v276_v40  ;;  %v285_v57 = vmul.f32 %v277_v50, %v277_v50  ;;  %v279_v59 = vmul.f32 %v688_v13, %v264_v52 }
  0x1c   : > { %v295_v35 = vsel %vm288_vm0, %v282_v29, 0.0  ;;  %v289_v36 = vsel %vm288_vm0, %v280_v30, 0.0  ;;  %v988_v37 = vmul.f32 %v280_v30, %v272_v23  ;;  %v991_v39 = vmul.f32 %v281_v31, %v273_v24 }
  0x1d   : > { %296 = vadd.xlane.f32.xlu1 %v295_v35  ;;  %290 = vadd.xlane.f32.xlu0 %v289_v36  ;;  %v994_v43 = vmul.f32 %v282_v29, %v274_v22  ;;  %v292_v45 = vsel %vm288_vm0, %v281_v31, 0.0  ;;  %v298_v54 = vsel %vm288_vm0, %v283_v46, 0.0  ;;  %v1006_v56 = vmul.f32 %v283_v46, %v275_v32 }
  0x1e   : > { %v377_v44 = vmul.f32 %v988_v37, %v988_v37  ;;  %v378_v47 = vmul.f32 %v991_v39, %v991_v39  ;;  %v301_v61 = vsel %vm288_vm0, %v284_v49, 0.0  ;;  %v1012_v63 = vmul.f32 %v284_v49, %v276_v40 }
  0x1f   : > { %v379_v55 = vmul.f32 %v994_v43, %v994_v43  ;;  %v380_v62 = vmul.f32 %v1006_v56, %v1006_v56  ;;  %v304_v0 = vsel %vm288_vm0, %v285_v57, 0.0  ;;  %v286_v1 = vmul.f32 %v278_v58, %v278_v58 }
  0x20   : > { %v385_v48 = vsel %vm288_vm0, %v377_v44, 0.0  ;;  %v388_v53 = vsel %vm288_vm0, %v378_v47, 0.0  ;;  %v381_v3 = vmul.f32 %v1012_v63, %v1012_v63  ;;  %v1018_v4 = vmul.f32 %v285_v57, %v277_v50 }
  0x21   : > { %386 = vadd.xlane.f32.xlu1 %v385_v48  ;;  %293 = vadd.xlane.f32.xlu0 %v292_v45  ;;  %v391_v60 = vsel %vm288_vm0, %v379_v55, 0.0  ;;  %v394_v2 = vsel %vm288_vm0, %v380_v62, 0.0  ;;  %v287_v8 = vmul.f32 %v279_v59, %v279_v59  ;;  %v307_v9 = vsel %vm288_vm0, %v286_v1, 0.0 }
  0x22   : > { %v397_v10 = vsel %vm288_vm0, %v381_v3, 0.0  ;;  %v382_v13 = vmul.f32 %v1018_v4, %v1018_v4  ;;  %v1026_v15 = vmul.f32 %v286_v1, %v278_v58  ;;  %v734_v23 = vpack.c.bf16 %v951_v7, %v948_v6 }
  0x23   : > { %v1024_v14 = vmul.f32 %v287_v8, %v279_v59  ;;  %v310_v17 = vsel %vm288_vm0, %v287_v8, 0.0  ;;  %v738_v24 = vpack.c.bf16 %v957_v11, %v945_v5  ;;  %v742_v25 = vpack.c.bf16 %v968_v19, %v960_v12 }
  0x24   : > { %v400_v16 = vsel %vm288_vm0, %v382_v13, 0.0  ;;  %v383_v20 = vmul.f32 %v1026_v15, %v1026_v15  ;;  %735 = vmatprep.subr.bf16.mxu0 %v734_v23  ;;  %750 = vmatprep.subr.bf16.mxu1 %v734_v23  ;;  %v746_v55 = vpack.c.bf16 %v981_v33, %v975_v27 }
  0x25   : > { %389 = vadd.xlane.f32.xlu1 %v388_v53  ;;  %299 = vadd.xlane.f32.xlu0 %v298_v54  ;;  %v384_v18 = vmul.f32 %v1024_v14, %v1024_v14 }
  0x26   : > { %v403_v22 = vsel %vm288_vm0, %v383_v20, 0.0  ;;  %737 = vmatpush3.bf16.msra.mxu0 %v734_v23  ;;  %754 = vmatpush3.bf16.msra.mxu1 %v734_v23 }
  0x27   : > { %v406_v21 = vsel %vm288_vm0, %v384_v18, 0.0  ;;  %739 = vmatprep.subr.bf16.mxu0 %v738_v24  ;;  %751 = vmatprep.subr.bf16.mxu1 %v738_v24 }
  0x29   : > { %392 = vadd.xlane.f32.xlu1 %v391_v60  ;;  %302 = vadd.xlane.f32.xlu0 %v301_v61 }
  0x2a   : > { %741 = vmatpush3.bf16.msra.mxu0 %v738_v24  ;;  %755 = vmatpush3.bf16.msra.mxu1 %v738_v24 }
  0x2b   : > { %743 = vmatprep.subr.bf16.mxu0 %v742_v25  ;;  %752 = vmatprep.subr.bf16.mxu1 %v742_v25 }
  0x2d   : > { %395 = vadd.xlane.f32.xlu1 %v394_v2  ;;  %305 = vadd.xlane.f32.xlu0 %v304_v0 }
  0x2e   : > { %745 = vmatpush3.bf16.msra.mxu0 %v742_v25  ;;  %756 = vmatpush3.bf16.msra.mxu1 %v742_v25 }
  0x2f   : > { %747 = vmatprep.subr.bf16.mxu0 %v746_v55  ;;  %753 = vmatprep.subr.bf16.mxu1 %v746_v55 }
  0x31   : > { %398 = vadd.xlane.f32.xlu1 %v397_v10  ;;  %308 = vadd.xlane.f32.xlu0 %v307_v9 }
  0x32   : > { %749 = vmatpush3.bf16.msra.mxu0 %v746_v55  ;;  %757 = vmatpush3.bf16.msra.mxu1 %v746_v55 }
  0x35   : > { %401 = vadd.xlane.f32.xlu1 %v400_v16  ;;  %311 = vadd.xlane.f32.xlu0 %v310_v17 }
  0x39   : > { %407 = vadd.xlane.f32.xlu1 %v406_v21  ;;  %404 = vadd.xlane.f32.xlu0 %v403_v22 }
  0xaa   : > { %v297_v26 = vpop.xlane.xlu1 %296  ;;  %v291_v6 = vpop.xlane.xlu0 %290 }
  0xab   : > { %792 = vrsqrt.f32 %v291_v6  ;;  %vm315_vm1 = vcmp.eq.f32.partialorder %v291_v6, inf  ;;  %v318_v32 = vand.u32 2147483648, %v291_v6  ;;  %vm317_vm2 = vcmp.eq.f32.partialorder %v291_v6, 0.0 }
  0xac   : > { %794 = vrsqrt.f32 %v297_v26  ;;  %vm329_vm5 = vcmp.eq.f32.partialorder %v297_v26, inf  ;;  %v332_v59 = vand.u32 2147483648, %v297_v26  ;;  %vm331_vm6 = vcmp.eq.f32.partialorder %v297_v26, 0.0 }
  0xae   : > { %v387_v5 = vpop.xlane.xlu1 %386  ;;  %v294_v7 = vpop.xlane.xlu0 %293 }
  0xaf   : > { %796 = vrsqrt.f32 %v387_v5  ;;  %vm322_vm3 = vcmp.eq.f32.partialorder %v294_v7, inf  ;;  %v325_v46 = vand.u32 2147483648, %v294_v7  ;;  %vm324_vm4 = vcmp.eq.f32.partialorder %v294_v7, 0.0 }
  0xb0   : > { %798 = vrsqrt.f32 %v294_v7 }
  0xb2   : > { %v390_v11 = vpop.xlane.xlu1 %389  ;;  %v1042_v28 = vpop.xlane.xlu0 %299 }
  0xb3   : > { %800 = vrsqrt.f32 %v390_v11  ;;  %vm336_vm7 = vcmp.eq.f32.partialorder %v1042_v28, inf  ;;  %v339_v3 = vand.u32 2147483648, %v1042_v28  ;;  %vm338_vm8 = vcmp.eq.f32.partialorder %v1042_v28, 0.0 }
  0xb4   : > { %802 = vrsqrt.f32 %v1042_v28 }
  0xb5   : > { %v793_v12 = vpop.eup %792 }
  0xb6   : > { %v393_v19 = vpop.xlane.xlu1 %392  ;;  %v1045_v29 = vpop.xlane.xlu0 %302  ;;  %v314_v31 = vmul.f32 %v793_v12, %v291_v6 }
  0xb7   : > { %v795_v30 = vpop.eup %794  ;;  %804 = vrsqrt.f32 %v393_v19  ;;  %vm343_vm9 = vcmp.eq.f32.partialorder %v1045_v29, inf  ;;  %v346_v21 = vand.u32 2147483648, %v1045_v29  ;;  %vm345_vm10 = vcmp.eq.f32.partialorder %v1045_v29, 0.0 }
  0xb8   : > { %806 = vrsqrt.f32 %v1045_v29  ;;  %v316_v35 = vsel %vm315_vm1, %v291_v6, %v314_v31  ;;  %v328_v38 = vmul.f32 %v795_v30, %v297_v26 }
  0xb9   : > { %v797_v34 = vpop.eup %796  ;;  %v319_v42 = vsel %vm317_vm2, %v318_v32, %v316_v35  ;;  %vm465_vm2 = vcmask 523264  }
  0xba   : > { %v799_v36 = vpop.eup %798  ;;  %v396_v40 = vpop.xlane.xlu1 %395  ;;  %v417_v45 = vmul.f32 %v797_v34, %v319_v42  ;;  %v330_v54 = vsel %vm329_vm5, %v297_v26, %v328_v38 }
  0xbb   : > { %v1048_v41 = vpop.xlane.xlu0 %305  ;;  %v321_v44 = vmul.f32 %v799_v36, %v294_v7  ;;  %808 = vrsqrt.f32 %v396_v40  ;;  %v333_v61 = vsel %vm331_vm6, %v332_v59, %v330_v54 }
  0xbc   : > { %810 = vrsqrt.f32 %v1048_v41  ;;  %v425_v48 = vmul.f32 %v417_v45, %v988_v37  ;;  %vm350_vm11 = vcmp.eq.f32.partialorder %v1048_v41, inf  ;;  %v353_v5 = vand.u32 2147483648, %v1048_v41 }
  0xbd   : > { %v801_v47 = vpop.eup %800  ;;  %v323_v49 = vsel %vm322_vm3, %v294_v7, %v321_v44  ;;  %vm352_vm12 = vcmp.eq.f32.partialorder %v1048_v41, 0.0 }
  0xbe   : > { %v803_v50 = vpop.eup %802  ;;  %v399_v51 = vpop.xlane.xlu1 %398  ;;  %v326_v53 = vsel %vm324_vm4, %v325_v46, %v323_v49  ;;  %433 = vxpose.xlu0.b32.start [1/8] (short) (narrow) %v425_v48, 32 }
  0xbf   : > { %v1052_v52 = vpop.xlane.xlu0 %308  ;;  %v335_v57 = vmul.f32 %v803_v50, %v1042_v28  ;;  %812 = vrsqrt.f32 %v399_v51  ;;  %v418_v58 = vmul.f32 %v801_v47, %v326_v53 }
  0xc0   : > { %814 = vrsqrt.f32 %v1052_v52  ;;  %vm357_vm13 = vcmp.eq.f32.partialorder %v1052_v52, inf  ;;  %v360_v31 = vand.u32 2147483648, %v1052_v52  ;;  %vm359_vm15 = vcmp.eq.f32.partialorder %v1052_v52, 0.0 }
  0xc1   : > { %v805_v37 = vpop.eup %804  ;;  %v426_v60 = vmul.f32 %v418_v58, %v991_v39  ;;  %v337_v1 = vsel %vm336_vm7, %v1042_v28, %v335_v57 }
  0xc2   : > { %v807_v27 = vpop.eup %806  ;;  %v402_v33 = vpop.xlane.xlu1 %401  ;;  %v419_v0 = vmul.f32 %v805_v37, %v333_v61  ;;  %v340_v9 = vsel %vm338_vm8, %v339_v3, %v337_v1 }
  0xc3   : > { %v312_v62 = vpop.xlane.xlu0 %311  ;;  %v342_v2 = vmul.f32 %v807_v27, %v1045_v29  ;;  %816 = vrsqrt.f32 %v402_v33  ;;  %434 = vxpose.xlu0.b32.cont [2/8] (short) (narrow) %v426_v60, 32 }
  0xc4   : > { %818 = vrsqrt.f32 %v312_v62  ;;  %v427_v39 = vmul.f32 %v419_v0, %v994_v43  ;;  %vm364_vm14 = vcmp.eq.f32.partialorder %v312_v62, inf  ;;  %v367_v32 = vand.u32 2147483648, %v312_v62 }
  0xc5   : > { %v809_v8 = vpop.eup %808  ;;  %v344_v18 = vsel %vm343_vm9, %v1045_v29, %v342_v2  ;;  %vm366_vm1 = vcmp.eq.f32.partialorder %v312_v62, 0.0 }
  0xc6   : > { %v811_v10 = vpop.eup %810  ;;  %v408_v13 = vpop.xlane.xlu1 %407  ;;  %v420_v17 = vmul.f32 %v809_v8, %v340_v9  ;;  %v347_v23 = vsel %vm345_vm10, %v346_v21, %v344_v18 }
  0xc7   : > { %v405_v16 = vpop.xlane.xlu0 %404  ;;  %v349_v20 = vmul.f32 %v811_v10, %v1048_v41  ;;  %820 = vrsqrt.f32 %v408_v13  ;;  %435 = vxpose.xlu0.b32.cont [3/8] (short) (narrow) %v427_v39, 32 }
  0xc8   : > { %822 = vrsqrt.f32 %v405_v16  ;;  %v428_v43 = vmul.f32 %v420_v17, %v1006_v56 }
  0xc9   : > { %v813_v22 = vpop.eup %812  ;;  %v351_v26 = vsel %vm350_vm11, %v1048_v41, %v349_v20 }
  0xca   : > { %v815_v24 = vpop.eup %814  ;;  %v421_v25 = vmul.f32 %v813_v22, %v347_v23  ;;  %v354_v11 = vsel %vm352_vm12, %v353_v5, %v351_v26 }
  0xcb   : > { %v356_v6 = vmul.f32 %v815_v24, %v1052_v52  ;;  %436 = vxpose.xlu0.b32.cont [4/8] (short) (narrow) %v428_v43, 32 }
  0xcc   : > { %v429_v7 = vmul.f32 %v421_v25, %v1012_v63 }
  0xcd   : > { %v817_v56 = vpop.eup %816  ;;  %v358_v29 = vsel %vm357_vm13, %v1052_v52, %v356_v6 }
  0xce   : > { %v819_v28 = vpop.eup %818  ;;  %v422_v12 = vmul.f32 %v817_v56, %v354_v11  ;;  %v361_v36 = vsel %vm359_vm15, %v360_v31, %v358_v29 }
  0xcf   : > { %v363_v19 = vmul.f32 %v819_v28, %v312_v62  ;;  %437 = vxpose.xlu0.b32.cont [5/8] (short) (narrow) %v429_v7, 32 }
  0xd0   : > { %v430_v30 = vmul.f32 %v422_v12, %v1018_v4 }
  0xd1   : > { %v821_v34 = vpop.eup %820  ;;  %v365_v63 = vsel %vm364_vm14, %v312_v62, %v363_v19 }
  0xd2   : > { %v823_v35 = vpop.eup %822  ;;  %v368_v38 = vsel %vm366_vm1, %v367_v32, %v365_v63 }
  0xd3   : > { %438 = vxpose.xlu0.b32.cont [6/8] (short) (narrow) %v430_v30, 32  ;;  %v423_v40 = vmul.f32 %v823_v35, %v361_v36  ;;  %v424_v42 = vmul.f32 %v821_v34, %v368_v38 }
  0xd5   : > { %v431_v41 = vmul.f32 %v423_v40, %v1026_v15  ;;  %v432_v4 = vmul.f32 %v424_v42, %v1024_v14 }
  0xd7   : > { %439 = vxpose.xlu0.b32.cont [7/8] (short) (narrow) %v431_v41, 32 }
  0xdb   : > { %440 = vxpose.xlu0.b32.end [8/8] (short) (narrow) %v432_v4, 32 }
 0x13f   : > { %v449_v44 = vpop.trf.xlu0 }
 0x140   : > { %728 = vmatprep.mubr.msk.f32.mxu0 %vm465_vm2, %v449_v44 }
 0x143   : > { %v450_v45 = vpop.trf.xlu0 }
 0x144   : > { %729 = vmatmul.mubr.msk.f32.vlgmr.msra.gmra.mrb[0].mxu0 %vm465_vm2, %v450_v45 }
 0x147   : > { %v451_v46 = vpop.trf.xlu0 }
 0x148   : > { %731 = vmatprep.mubr.msk.f32.mxu1 %vm465_vm2, %v451_v46 }
 0x14b   : > { %v452_v47 = vpop.trf.xlu0 }
 0x14c   : > { %732 = vmatmul.mubr.msk.f32.vlgmr.msra.gmra.mrb[0].mxu1 %vm465_vm2, %v452_v47 }
 0x217   : > { %v730_v48 = vpop.f32.mrb[0].mxu0 }
 0x218   : > { %570 = vst.msk [vmem:[%s568_s19 + $0x8] sm:$0xff] %vm288_vm0, %v730_v48  ;;  %v544_v15 = vpop.f32.mrb[1].mxu0 }
 0x219   : > { %569 = vst.msk [vmem:[%s568_s19] sm:$0xff] %vm288_vm0, %v544_v15 }
 0x21f   : > { %v733_v14 = vpop.f32.mrb[0].mxu1 }
 0x220   : > { %572 = vst.msk [vmem:[%s568_s19 + $0x18] sm:$0xff] %vm288_vm0, %v733_v14  ;;  %v554_v49 = vpop.f32.mrb[1].mxu1 }
 0x221   : > { %571 = vst.msk [vmem:[%s568_s19 + $0x10] sm:$0xff] %vm288_vm0, %v554_v49 }
 0x222   : > { %837 = shalt.err (!%p834_p12)
}
 0x223   : > { %s838_s24 = scalar_lea.hbm %s1129_s3, 1024 }
 0x224   : > { %p839_p13 = scmp.ne.s32.totalorder %s1129_s3, %s838_s24  ;;  %p844_p2 = scmp.lt.u32.totalorder %s838_s24, %s1129_s3 }
 0x226   : > { %p840_p0 = pnand %p839_p13, %p1089_p5 }
 0x228   : > { %p841_p1 = pneg %p840_p0 }
 0x22a   : > { %p846_p3 = pnand %p844_p2, %p841_p1 }
 0x22c   : > { %849 = shalt.err (!%p846_p3)
}
 0x22d   : > { %s879_s29 = smov 128   ;;  %s880_s30 = smov 8  }
 0x22e   : > { %759 = dma.vmem_to_hbm [thread:$0]  (%p1089_p5), %s601_s21, 1024, %s1129_s3, [#allocation3], %s879_s29, %s879_s29, %s880_s30  }
 0x22f   : > { %863 = dma.done.wait (%p1089_p5), [#allocation3], 1024  }
 0x230   : > { %865 = vsyncadd (%p1089_p5), [#allocation3], 4294966272 }
 0x231 PF: > { %s14_s14 = sadd.s32 1, %s876_s14   ;;  %s1131_s12 = smov %s872_s13 }
 0x232   : > { %p11_p4 = scmp.ge.s32.totalorder %s14_s14, 4   ;;  %s1132_s13 = smov %s1134_s16 }
 0x234   :  { %13 = sbr.rel (!%p11_p4) target bundleno = 2 (0x2), region = 73 }
 0x23b   :  { %616 = vsyncpa [#allocation3], 1 }
 0x23c   :  { %618 = vsyncpa [#allocation3 + $0x1], 1 }

</bundles_post_ra>
